<compile_context>
chip_gen: v7x
topology: tpu7x:2x2x1
jax: 0.10.0
libtpu: 0.0.40
codegen_flags: <defaults>
</compile_context>

<pallas_src>
import jax
import jax.numpy as jnp
from jax.experimental import pallas as pl
from jax.experimental.pallas import tpu as pltpu


def _round_up(x, m):
    return ((x + m - 1) // m) * m


def _feedforward_kernel(x_ref, w1_ref, w2_ref, o_ref, acc_ref):
    # x_ref:  (tm, d_model)   input rows (original dtype, cast to bf16 here)
    # w1_ref: (d_model, tf)   bf16, pre-transposed W1 tile (hidden chunk f)
    # w2_ref: (tf, d_model)   bf16, pre-transposed W2 tile (hidden chunk f)
    # o_ref:  (tm, d_model)   output tile (resident across the f axis)
    # acc_ref:(tm, d_model)   f32 accumulator scratch
    f = pl.program_id(1)

    @pl.when(f == 0)
    def _():
        acc_ref[...] = jnp.zeros_like(acc_ref)

    x = x_ref[...].astype(w1_ref.dtype)
    # h = x @ W1^T chunk : (tm, d_model) @ (d_model, tf) -> (tm, tf), f32 acc.
    h = jnp.dot(x, w1_ref[...], preferred_element_type=jnp.float32)
    # sigmoid(h) = 0.5 * (tanh(h/2) + 1)  -> one EUP push per element.
    h = 0.5 * (jnp.tanh(0.5 * h) + 1.0)
    # TODO(synk): dropout omitted (eval / inference mode -> identity).
    acc_ref[...] += jnp.dot(h.astype(w2_ref.dtype), w2_ref[...],
                            preferred_element_type=jnp.float32)

    @pl.when(f == pl.num_programs(1) - 1)
    def _():
        o_ref[...] = acc_ref[...].astype(o_ref.dtype)


def feedforward(x, w1, w2, *, tm=512, tf=512, compute_dtype=jnp.bfloat16):
    """ETSFormer Feedforward, bias-free, eval mode.

    x:  (B, S, d_model)
    w1: (dim_ff, d_model)  -- nn.Linear(d_model, dim_ff).weight
    w2: (d_model, dim_ff)  -- nn.Linear(dim_ff, d_model).weight
    """
    B, S, d_model = x.shape
    dim_ff = w1.shape[0]
    assert w1.shape == (dim_ff, d_model)
    assert w2.shape == (d_model, dim_ff)
    out_dtype = x.dtype
    n_rows = B * S

    # Hidden dim: pad weights (only) to a multiple of the hidden tile tf_eff
    # (itself a multiple of 128). Exact: padded W1 cols are zero -> sigmoid(0)
    # = 0.5 -> meets zero W2 rows -> contributes 0.
    Fp128 = _round_up(dim_ff, 128)
    tf_eff = min(tf, Fp128)
    Fp = _round_up(Fp128, tf_eff)

    # Row tile: multiple of 16 (bf16 sublane pack); no row padding of x — the
    # ragged last row block is handled by the cdiv grid (garbage rows only
    # produce garbage output rows that are masked on writeback).
    tm_eff = min(tm, _round_up(n_rows, 16))
    grid = (pl.cdiv(n_rows, tm_eff), Fp // tf_eff)

    x2d = x.reshape(n_rows, d_model)
    # Pre-transpose weights once (plain NN matmul in-kernel, no per-step
    # transposed MXU weight push) and cast to bf16.
    w1t = jnp.pad(w1.T.astype(compute_dtype), ((0, 0), (0, Fp - dim_ff)))
    w2t = jnp.pad(w2.T.astype(compute_dtype), ((0, Fp - dim_ff), (0, 0)))

    # VMEM budget: double-buffered x / weight / out tiles + f32 accumulator +
    # f32 hidden intermediate, 2x headroom, clamped under physical capacity.
    csize = jnp.dtype(compute_dtype).itemsize
    xsize = jnp.dtype(x2d.dtype).itemsize
    osize = jnp.dtype(out_dtype).itemsize
    est = (2 * tm_eff * d_model * xsize        # x tile (double-buffered)
           + 2 * d_model * tf_eff * csize      # w1t tile (double-buffered)
           + 2 * tf_eff * d_model * csize      # w2t tile (double-buffered)
           + 2 * tm_eff * d_model * osize      # out tile (double-buffered)
           + tm_eff * d_model * 4              # f32 accumulator scratch
           + 2 * tm_eff * tf_eff * 4)          # f32 hidden intermediate
    try:
        vmem_cap = pltpu.get_tpu_info().vmem_capacity_bytes
    except Exception:
        vmem_cap = 64 * 1024 * 1024            # conservative (v7x per-TC)
    vmem_bytes = int(min(max(2 * est, 8 * 1024 * 1024), int(0.7 * vmem_cap)))

    cost = pl.CostEstimate(
        flops=4 * n_rows * d_model * Fp,
        transcendentals=n_rows * Fp,
        bytes_accessed=(x2d.size * xsize + w1t.size * csize + w2t.size * csize
                        + n_rows * d_model * osize),
    )

    out2d = pl.pallas_call(
        _feedforward_kernel,
        out_shape=jax.ShapeDtypeStruct((n_rows, d_model), out_dtype),
        grid_spec=pltpu.PrefetchScalarGridSpec(
            num_scalar_prefetch=0,
            grid=grid,
            in_specs=[
                # x tile: constant index along f -> fetched once per row tile.
                pl.BlockSpec((tm_eff, d_model), lambda i, f: (i, 0)),
                # weight tiles walk the hidden dim.
                pl.BlockSpec((d_model, tf_eff), lambda i, f: (0, f)),
                pl.BlockSpec((tf_eff, d_model), lambda i, f: (f, 0)),
            ],
            out_specs=pl.BlockSpec((tm_eff, d_model), lambda i, f: (i, 0)),
            scratch_shapes=[pltpu.VMEM((tm_eff, d_model), jnp.float32)],
        ),
        compiler_params=pltpu.CompilerParams(
            dimension_semantics=("parallel", "arbitrary"),
            vmem_limit_bytes=vmem_bytes),
        cost_estimate=cost,
    )(x2d, w1t, w2t)

    return out2d.reshape(B, S, d_model)


def feedforward_ref(x, w1, w2):
    h = jax.nn.sigmoid(jnp.einsum("bsd,fd->bsf", x, w1))
    return jnp.einsum("bsf,df->bsd", h, w2)


if __name__ == "__main__":
    # Small shapes consistent with the module: (batch, seq, d_model)
    B, S, d_model, dim_ff = 2, 8, 32, 64

    key = jax.random.PRNGKey(0)
    kx, k1, k2 = jax.random.split(key, 3)

    x = jax.random.normal(kx, (B, S, d_model), dtype=jnp.float32)
    # nn.Linear stores weight as (out_features, in_features)
    bound1 = 1.0 / (d_model ** 0.5)
    bound2 = 1.0 / (dim_ff ** 0.5)
    w1 = jax.random.uniform(k1, (dim_ff, d_model), minval=-bound1, maxval=bound1,
                            dtype=jnp.float32)
    w2 = jax.random.uniform(k2, (d_model, dim_ff), minval=-bound2, maxval=bound2,
                            dtype=jnp.float32)

    out = feedforward(x, w1, w2)
    out = jax.block_until_ready(out)

    ref = feedforward_ref(x, w1, w2)
    assert out.shape == (B, S, d_model)
    # bf16 MXU path vs f32 reference -> loosened tolerances
    assert jnp.allclose(out, ref, atol=2e-2, rtol=2e-2)

    print("KERNEL_OK")
</pallas_src>

<mosaic_0001>
module attributes {stable_mosaic.version = 11 : i64} {
  func.func @_feedforward_kernel(%arg0: i32, %arg1: i32, %arg2: memref<16x32xf32, #tpu.memory_space<vmem>>, %arg3: memref<32x128xbf16, #tpu.memory_space<vmem>>, %arg4: memref<128x32xbf16, #tpu.memory_space<vmem>>, %arg5: memref<16x32xf32, #tpu.memory_space<vmem>>, %arg6: memref<16x32xf32, #tpu.memory_space<vmem>>) attributes {dimension_semantics = [#tpu.dimension_semantics<parallel>, #tpu.dimension_semantics<arbitrary>], iteration_bounds = array<i64: 1, 1>, scalar_prefetch = 0 : i64, scratch_operands = 1 : i64, tpu.core_type = #tpu.core_type<tc>, window_params = [{transform_indices = @transform_0, window_bounds = array<i64: 16, 32>}, {transform_indices = @transform_1, window_bounds = array<i64: 32, 128>}, {transform_indices = @transform_2, window_bounds = array<i64: 128, 32>}, {transform_indices = @transform_3, window_bounds = array<i64: 16, 32>}]} {
    %c0_i32 = arith.constant 0 : i32
    %0 = arith.cmpi eq, %arg1, %c0_i32 : i32
    %1 = arith.extui %0 : i1 to i32
    %c0_i32_0 = arith.constant 0 : i32
    %2 = arith.cmpi ne, %1, %c0_i32_0 : i32
    scf.if %2 {
      %cst_16 = arith.constant 0.000000e+00 : f32
      %23 = vector.broadcast %cst_16 : f32 to vector<16x32xf32>
      %c0_17 = arith.constant 0 : index
      %c0_18 = arith.constant 0 : index
      %24 = vector.load %arg6[%c0_17, %c0_18] : memref<16x32xf32, #tpu.memory_space<vmem>>, vector<16x32xf32>
      tpu.vector_store %arg6[%c0_17, %c0_18], %23 {strides = array<i32>} : memref<16x32xf32, #tpu.memory_space<vmem>>, vector<16x32xf32>,
    } else {
    }
    %c0 = arith.constant 0 : index
    %c0_1 = arith.constant 0 : index
    %3 = vector.load %arg2[%c0, %c0_1] : memref<16x32xf32, #tpu.memory_space<vmem>>, vector<16x32xf32>
    %4 = arith.truncf %3 : vector<16x32xf32> to vector<16x32xbf16>
    %c0_2 = arith.constant 0 : index
    %c0_3 = arith.constant 0 : index
    %5 = vector.load %arg3[%c0_2, %c0_3] : memref<32x128xbf16, #tpu.memory_space<vmem>>, vector<32x128xbf16>
    %cst = arith.constant dense<0.000000e+00> : vector<16x128xf32>
    %6 = tpu.matmul %4, %5, %cst {dimension_numbers = #tpu.dot_dimension_numbers<[1], [0], [0], [1], [0, 0, 1, 1], [], []>} : vector<16x32xbf16>, vector<32x128xbf16>, vector<16x128xf32> -> vector<16x128xf32>
    %cst_4 = arith.constant 5.000000e-01 : f32
    %7 = vector.broadcast %cst_4 : f32 to vector<16x128xf32>
    %8 = arith.mulf %7, %6 : vector<16x128xf32>
    %9 = math.tanh %8 : vector<16x128xf32>
    %cst_5 = arith.constant 1.000000e+00 : f32
    %10 = vector.broadcast %cst_5 : f32 to vector<16x128xf32>
    %11 = arith.addf %9, %10 : vector<16x128xf32>
    %cst_6 = arith.constant 5.000000e-01 : f32
    %12 = vector.broadcast %cst_6 : f32 to vector<16x128xf32>
    %13 = arith.mulf %12, %11 : vector<16x128xf32>
    %c0_7 = arith.constant 0 : index
    %c0_8 = arith.constant 0 : index
    %14 = vector.load %arg6[%c0_7, %c0_8] : memref<16x32xf32, #tpu.memory_space<vmem>>, vector<16x32xf32>
    %15 = arith.truncf %13 : vector<16x128xf32> to vector<16x128xbf16>
    %c0_9 = arith.constant 0 : index
    %c0_10 = arith.constant 0 : index
    %16 = vector.load %arg4[%c0_9, %c0_10] : memref<128x32xbf16, #tpu.memory_space<vmem>>, vector<128x32xbf16>
    %cst_11 = arith.constant dense<0.000000e+00> : vector<16x32xf32>
    %17 = tpu.matmul %15, %16, %cst_11 {dimension_numbers = #tpu.dot_dimension_numbers<[1], [0], [0], [1], [0, 0, 1, 1], [], []>} : vector<16x128xbf16>, vector<128x32xbf16>, vector<16x32xf32> -> vector<16x32xf32>
    %18 = arith.addf %14, %17 : vector<16x32xf32>
    %c0_12 = arith.constant 0 : index
    %c0_13 = arith.constant 0 : index
    %19 = vector.load %arg6[%c0_12, %c0_13] : memref<16x32xf32, #tpu.memory_space<vmem>>, vector<16x32xf32>
    tpu.vector_store %arg6[%c0_12, %c0_13], %18 {strides = array<i32>} : memref<16x32xf32, #tpu.memory_space<vmem>>, vector<16x32xf32>,
    %c0_i32_14 = arith.constant 0 : i32
    %20 = arith.cmpi eq, %arg1, %c0_i32_14 : i32
    %21 = arith.extui %20 : i1 to i32
    %c0_i32_15 = arith.constant 0 : i32
    %22 = arith.cmpi ne, %21, %c0_i32_15 : i32
    scf.if %22 {
      %c0_16 = arith.constant 0 : index
      %c0_17 = arith.constant 0 : index
      %23 = vector.load %arg6[%c0_16, %c0_17] : memref<16x32xf32, #tpu.memory_space<vmem>>, vector<16x32xf32>
      %c0_18 = arith.constant 0 : index
      %c0_19 = arith.constant 0 : index
      %24 = vector.load %arg5[%c0_18, %c0_19] : memref<16x32xf32, #tpu.memory_space<vmem>>, vector<16x32xf32>
      tpu.vector_store %arg5[%c0_18, %c0_19], %23 {strides = array<i32>} : memref<16x32xf32, #tpu.memory_space<vmem>>, vector<16x32xf32>,
    } else {
    }
    return
  }
  func.func @transform_0(%arg0: i32, %arg1: i32) -> (i32, i32) {
    %c0_i32 = arith.constant 0 : i32
    %c0_i32_0 = arith.constant 0 : i32
    return %arg0, %c0_i32 : i32, i32
  }
  func.func @transform_1(%arg0: i32, %arg1: i32) -> (i32, i32) {
    %c0_i32 = arith.constant 0 : i32
    %c0_i32_0 = arith.constant 0 : i32
    return %c0_i32, %arg1 : i32, i32
  }
  func.func @transform_2(%arg0: i32, %arg1: i32) -> (i32, i32) {
    %c0_i32 = arith.constant 0 : i32
    %c0_i32_0 = arith.constant 0 : i32
    return %arg1, %c0_i32 : i32, i32
  }
  func.func @transform_3(%arg0: i32, %arg1: i32) -> (i32, i32) {
    %c0_i32 = arith.constant 0 : i32
    %c0_i32_0 = arith.constant 0 : i32
    return %arg0, %c0_i32 : i32, i32
  }
}

</mosaic_0001>

<bundles_post_ra>
// kernel: tpu_custom_call.1
= control target key start
LH: loop header
LB: loop body
LE: loop exit
PB: predicated region body
PF: predicated region fallthrough
CT: control target
= control target key end

     0   :  { %v324_v1 = vmov 0.0   ;;  %vm325_vm0 = vmmov 0   ;;  %vm20_vm1 = vcmask 261120   ;;  %s404_s0 = inlined_call_operand.vmem [shape: f32[16,32], index: 0, kind: input, shape index: {}]   ;;  %s405_s1 = inlined_call_operand.vmem [shape: bf16[32,128], index: 1, kind: input, shape index: {}]   ;;  %s406_s2 = inlined_call_operand.vmem [shape: bf16[128,32], index: 2, kind: input, shape index: {}]   ;;  %s407_s3 = inlined_call_operand.hbm [shape: f32[16,32], index: 3, kind: output, shape index: {}]  }
   0x1   :  { %v286_v0 = vld [vmem:[%s405_s1] sm:$0xff]   ;;  %253 = vmatprep.subr.bf16.mxu0 %v324_v1  ;;  %v287_v2 = vld [vmem:[%s405_s1 + $0x8] sm:$0xff]   ;;  %261 = vmatprep.subr.bf16.mxu1 %v324_v1  ;;  %21 = vst.msk [vmem:[#allocation2] sm:$0xff] %vm20_vm1, %v324_v1  ;;  %22 = vst.msk [vmem:[#allocation2 + $0x8] sm:$0xff] %vm20_vm1, %v324_v1 }
   0x2   :  { %254 = vmatpush3.bf16.msra.mxu0 %v286_v0  ;;  %257 = vmatprep.mubr.msk.bf16.mxu0 %vm325_vm0, %v324_v1  ;;  %v23_v3 = vld [vmem:[%s404_s0] sm:$0xff]  ;;  %v24_v4 = vld [vmem:[%s404_s0 + $0x8] sm:$0xff]  ;;  %v290_v8 = vld [vmem:[%s406_s2 + $0x10] sm:$0xff]  }
   0x3   :  { %255 = vmatprep.subr.bf16.mxu0 %v324_v1  ;;  %v288_v5 = vld [vmem:[%s406_s2] sm:$0xff]   ;;  %277 = vmatprep.mubr.msk.bf16.mxu1 %vm325_vm0, %v324_v1  ;;  %v25_v6 = vpack.c.bf16 %v24_v4, %v23_v3  ;;  %v289_v7 = vld [vmem:[%s406_s2 + $0x8] sm:$0xff]  }
   0x4   :  { %262 = vmatpush3.bf16.msra.mxu1 %v288_v5 }
   0x5   :  { %263 = vmatprep.subr.bf16.mxu1 %v324_v1 }
   0x6   :  { %256 = vmatpush3.bf16.msra.mxu0 %v287_v2 }
   0x8   :  { %264 = vmatpush3.bf16.msra.mxu1 %v289_v7 }
   0x9   :  { %258 = vmatmul.mubr.msk.bf16.vlgmr.msra.gmra.mrb[0].mxu0 %vm20_vm1, %v25_v6 }
   0xa   :  { %8 = vsyncpa [#allocation4], 0  ;;  %265 = vmatprep.subr.bf16.mxu1 %v324_v1  ;;  %v291_v9 = vld [vmem:[%s406_s2 + $0x18] sm:$0xff]   ;;  %v292_v10 = vld [vmem:[%s406_s2 + $0x20] sm:$0xff]  }
   0xb   :  { %v293_v11 = vld [vmem:[%s406_s2 + $0x28] sm:$0xff]   ;;  %v294_v12 = vld [vmem:[%s406_s2 + $0x30] sm:$0xff]   ;;  %v295_v13 = vld [vmem:[%s406_s2 + $0x38] sm:$0xff]   ;;  %s326_s2 = smov [#allocation3]  }
   0xc   :  { %266 = vmatpush3.bf16.msra.mxu1 %v290_v8  ;;  %v95_v27 = vld [vmem:[#allocation2] sm:$0xff]  ;;  %v96_v29 = vld [vmem:[#allocation2 + $0x8] sm:$0xff]  ;;  %s219_s7 = sshll.u32 %s326_s2, 4  ;;  %s220_s7 = int_to_ptr.vmem [resolvable:$true] %s219_s7 }
   0xd   :  { %267 = vmatprep.subr.bf16.mxu1 %v324_v1  ;;  %s300_s8 = scalar_lea.vmem %s220_s7, 256  ;;  %p305_p1 = scmp.lt.s32.totalorder %s220_s7, %s220_s7 }
   0xe   :  { %p301_p0 = scmp.ne.s32.totalorder %s220_s7, %s300_s8  ;;  %p306_p2 = scmp.lt.s32.totalorder %s300_s8, %s300_s8 }
  0x10   :  { %268 = vmatpush3.bf16.msra.mxu1 %v291_v9  ;;  %p307_p3 = por %p306_p2, %p305_p1 }
  0x11   :  { %269 = vmatprep.subr.bf16.mxu1 %v324_v1 }
  0x12   :  { %p308_p4 = pnand %p307_p3, %p301_p0 }
  0x14   :  { %270 = vmatpush3.bf16.msra.mxu1 %v292_v10 }
  0x15   :  { %271 = vmatprep.subr.bf16.mxu1 %v324_v1 }
  0x18   :  { %272 = vmatpush3.bf16.msra.mxu1 %v293_v11 }
  0x19   :  { %273 = vmatprep.subr.bf16.mxu1 %v324_v1 }
  0x1c   :  { %274 = vmatpush3.bf16.msra.mxu1 %v294_v12 }
  0x1d   :  { %275 = vmatprep.subr.bf16.mxu1 %v324_v1 }
  0x20   :  { %276 = vmatpush3.bf16.msra.mxu1 %v295_v13 }
  0xdc   :  { %v80_v14 = vpop.f32.mrb[0].mxu0 }
  0xdd   :  { %v87_v15 = vmul.f32 0.5, %v80_v14  ;;  %v259_v16 = vpop.f32.mrb[1].mxu0 }
  0xde   :  { %v83_v17 = vpop.f32.mrb[2].mxu0 }
  0xdf   :  { %296 = vtanh.f32 %v87_v15  ;;  %v88_v18 = vmul.f32 0.5, %v83_v17  ;;  %v260_v19 = vpop.f32.mrb[3].mxu0 }
  0xe1   :  { %298 = vtanh.f32 %v88_v18 }
  0xe9   :  { %v297_v20 = vpop.eup %296 }
  0xea   :  { %v91_v21 = vadd.f32 1.0, %v297_v20 }
  0xeb   :  { %v299_v22 = vpop.eup %298 }
  0xec   :  { %v92_v23 = vadd.f32 1.0, %v299_v22  ;;  %v93_v24 = vmul.f32 0.5, %v91_v21 }
  0xee   :  { %v94_v25 = vmul.f32 0.5, %v92_v23 }
  0xf0   :  { %v97_v26 = vpack.c.bf16 %v94_v25, %v93_v24 }
  0xf2   :  { %278 = vmatmul.mubr.bf16.vlgmr.msra.gmra.mrb[0].mxu1 %v97_v26 }
 0x1c5   :  { %v196_v28 = vpop.f32.mrb[0].mxu1 }
 0x1c6   :  { %v203_v30 = vadd.f32 %v196_v28, %v95_v27  ;;  %v279_v31 = vpop.f32.mrb[1].mxu1 }
 0x1c7   :  { %v199_v32 = vpop.f32.mrb[2].mxu1 }
 0x1c8   :  { %205 = vst.msk [vmem:[#allocation2] sm:$0xff] %vm20_vm1, %v203_v30  ;;  %v204_v33 = vadd.f32 %v199_v32, %v96_v29  ;;  %v280_v34 = vpop.f32.mrb[3].mxu1 }
 0x1ca   :  { %206 = vst.msk [vmem:[#allocation2 + $0x8] sm:$0xff] %vm20_vm1, %v204_v33 }
 0x1cf   :  { %v210_v35 = vld [vmem:[#allocation2] sm:$0xff] }
 0x1d0   :  { %212 = vst.msk [vmem:[#allocation3] sm:$0xff] %vm20_vm1, %v210_v35 }
 0x1d1   :  { %v211_v36 = vld [vmem:[#allocation2 + $0x8] sm:$0xff] }
 0x1d2   :  { %213 = vst.msk [vmem:[#allocation3 + $0x8] sm:$0xff] %vm20_vm1, %v211_v36 }
 0x1d3   :  { %311 = shalt.err (!%p308_p4)
}
 0x1d4   :  { %s312_s11 = scalar_lea.hbm %s407_s3, 256 }
 0x1d5   :  { %p313_p5 = scmp.ne.s32.totalorder %s407_s3, %s312_s11  ;;  %p316_p6 = scmp.lt.u32.totalorder %s312_s11, %s407_s3 }
 0x1d7   :  { %p318_p7 = pnand %p316_p6, %p313_p5 }
 0x1d9   :  { %321 = shalt.err (!%p318_p7)
}
 0x1da   :  { %s327_s16 = smov 128   ;;  %s328_s17 = smov 8  }
 0x1db   :  { %225 = dma.vmem_to_hbm [thread:$0]  %s220_s7, 256, %s407_s3, [#allocation4], %s327_s16, %s327_s16, %s328_s17  }
 0x1dc   :  { %322 = dma.done.wait [#allocation4], 256  }
 0x1dd   :  { %323 = vsyncadd [#allocation4], 4294967040 }
 0x1de   :  { %229 = vsyncpa [#allocation4], 1 }

</bundles_post_ra>
